<compile_context>
chip_gen: v7x
topology: tpu7x:2x2x1
jax: 0.10.0
libtpu: 0.0.40
codegen_flags: <defaults>
</compile_context>

<pallas_src>
import functools

import jax
import jax.numpy as jnp
from jax.experimental import pallas as pl
from jax.experimental.pallas import tpu as pltpu


def _ce_label_smooth_kernel(
    targets_ref, logits_ref, out_ref, *, epsilon, num_classes, batch_size, tile_b
):
    pid = pl.program_id(0)

    logits = logits_ref[...]                                   # (TILE_B, C), input dtype
    tb, C = logits.shape

    # --- row statistics on the raw tile, accumulated in f32 -------------------
    row_max = jnp.max(logits, axis=1, keepdims=True).astype(jnp.float32)       # (tb, 1)
    sum_logits = jnp.sum(logits, axis=1, keepdims=True, dtype=jnp.float32)     # (tb, 1)

    # Target logit via masked lane reduction on the raw tile (no one-hot).
    col_ids = jax.lax.broadcasted_iota(jnp.int32, (tb, C), 1)
    start = pid * tile_b
    if tile_b % 8 == 0:
        start = pl.multiple_of(start, 8)
    tgt = targets_ref[pl.ds(start, tb), :]                                     # (tb, 1) int32
    tgt_logit = jnp.sum(
        jnp.where(col_ids == tgt, logits, 0), axis=1, keepdims=True, dtype=jnp.float32
    )                                                                          # (tb, 1)

    # --- log-sum-exp: the shifted tile is only consumed by exp (lazy f32 cast) -
    shifted = logits.astype(jnp.float32) - row_max                             # (tb, C)
    lse = jnp.log(jnp.sum(jnp.exp(shifted), axis=1, keepdims=True))            # (tb, 1)

    # Algebraic shift of the raw-tile reductions:
    #   target_lp       = (tgt_logit - row_max) - lse
    #   sum_c log_probs = (sum_logits - C*row_max) - C*lse
    target_lp = (tgt_logit - row_max) - lse
    sum_lp = sum_logits - float(num_classes) * (row_max + lse)

    per_row = -((1.0 - epsilon) * target_lp + (epsilon / num_classes) * sum_lp)

    # Mask padded rows of a ragged last tile (keeps 1/B normalization exact).
    row_ids = pid * tile_b + jax.lax.broadcasted_iota(jnp.int32, (tb, 1), 0)
    per_row = jnp.where(row_ids < batch_size, per_row, 0.0)

    partial = jnp.sum(per_row) * (1.0 / batch_size)

    # Lane-dense (8, 128) partial block: one vreg splat; wrapper reads [0, 0].
    out_ref[...] = jnp.full(out_ref.shape, partial, dtype=out_ref.dtype)


def _vmem_capacity_bytes():
    """Per-core VMEM capacity; conservative (v7x) fallback if the query fails."""
    try:
        return int(pltpu.get_tpu_info().vmem_capacity_bytes)
    except Exception:
        return 64 * 1024 * 1024


def _choose_tile_b(batch, num_classes, itemsize, target_bytes):
    """Largest batch tile (multiple of 8) whose logits tile is ~target_bytes.

    Capped at ~ceil(B/2) when the batch allows it so nb >= 2 and the "parallel"
    batch axis keeps both v7x TensorCores busy.
    """
    tile = target_bytes // max(1, num_classes * itemsize)
    tile = max(8, (tile // 8) * 8)
    if batch >= 16:
        half = (((batch + 1) // 2) + 7) // 8 * 8
        tile = min(tile, half)
    if tile >= batch:
        return int(batch)
    return int(tile)


def cross_entropy_label_smooth(logits, targets, *, num_classes, epsilon=0.1, tile_b=None):
    """logits: (B, C) float (f32 or bf16); targets: (B,) int class indices."""
    B, C = logits.shape
    assert C == num_classes
    itemsize = jnp.dtype(logits.dtype).itemsize

    # Chip-aware sizing: ~12 MiB tiles / 96 MiB scoped VMEM on 128 MiB chips
    # (v5e/v6e), ~6 MiB tiles / 52 MiB on 64 MiB-per-TC chips (v7x / fallback).
    vmem_cap = _vmem_capacity_bytes()
    if vmem_cap > 64 * 1024 * 1024:
        target_tile_bytes = 12 * 1024 * 1024
        vmem_ceiling = 96 * 1024 * 1024
    else:
        target_tile_bytes = 6 * 1024 * 1024
        vmem_ceiling = 52 * 1024 * 1024

    if tile_b is None:
        tile_b = _choose_tile_b(B, C, itemsize, target_tile_bytes)
    tile_b = int(tile_b)
    nb = pl.cdiv(B, tile_b)

    # Targets: a single resident VMEM block (padded to nb*tile_b rows, sliced
    # per step inside the kernel) -> no per-step narrow DMA.
    b_pad = nb * tile_b
    targets_2d = jnp.zeros((b_pad, 1), jnp.int32).at[:B, 0].set(targets.astype(jnp.int32))

    kernel = functools.partial(
        _ce_label_smooth_kernel,
        epsilon=float(epsilon),
        num_classes=int(num_classes),
        batch_size=int(B),
        tile_b=tile_b,
    )

    # VMEM budget: double-buffered input tiles + ~5 full-size f32 temporaries
    # (exp/shifted/iota/select) + resident targets + output/slack.
    in_tile_bytes = tile_b * C * itemsize
    f32_tile_bytes = tile_b * C * 4
    budget = 2 * in_tile_bytes + 5 * f32_tile_bytes + b_pad * 4 + (2 << 20)
    vmem_limit = int(min(vmem_ceiling, max(32 * 1024 * 1024, budget)))

    partials = pl.pallas_call(
        kernel,
        out_shape=jax.ShapeDtypeStruct((nb * 8, 128), jnp.float32),
        grid=(nb,),
        in_specs=[
            pl.BlockSpec((b_pad, 1), lambda i: (0, 0)),    # targets (resident, int32)
            pl.BlockSpec((tile_b, C), lambda i: (i, 0)),   # logits (pipelined)
        ],
        out_specs=pl.BlockSpec((8, 128), lambda i: (i, 0)),
        compiler_params=pltpu.CompilerParams(
            dimension_semantics=("parallel",),
            vmem_limit_bytes=vmem_limit,
        ),
    )(targets_2d, logits)

    # Each block is a constant fill of its partial; read one element per block.
    return jnp.sum(partials[::8, 0])


def _reference(logits, targets, *, num_classes, epsilon=0.1):
    """Pure-JAX reference mirroring the PyTorch forward exactly."""
    log_probs = jax.nn.log_softmax(logits.astype(jnp.float32), axis=1)
    one_hot = jax.nn.one_hot(targets, num_classes, dtype=jnp.float32)
    smoothed = (1.0 - epsilon) * one_hot + epsilon / num_classes
    return jnp.sum(jnp.mean(-smoothed * log_probs, axis=0))


if __name__ == "__main__":
    epsilon = 0.1
    key = jax.random.PRNGKey(0)

    # Case 1: module-like toy shape (single block).
    num_classes = 32
    batch = 8
    k_logits, k_targets, key = jax.random.split(key, 3)
    logits = jax.random.normal(k_logits, (batch, num_classes), dtype=jnp.float32)
    targets = jax.random.randint(k_targets, (batch,), 0, num_classes, dtype=jnp.int32)

    loss = cross_entropy_label_smooth(
        logits, targets, num_classes=num_classes, epsilon=epsilon
    )
    loss = jax.block_until_ready(loss)
    ref = _reference(logits, targets, num_classes=num_classes, epsilon=epsilon)
    assert jnp.allclose(loss, ref, atol=1e-5, rtol=1e-5), (loss, ref)

    # Case 2: multi-block batch grid with a ragged last tile (exercises masking
    # and the resident-targets slicing).
    num_classes2 = 128
    batch2 = 20
    k_logits2, k_targets2, key = jax.random.split(key, 3)
    logits2 = jax.random.normal(k_logits2, (batch2, num_classes2), dtype=jnp.float32)
    targets2 = jax.random.randint(k_targets2, (batch2,), 0, num_classes2, dtype=jnp.int32)

    loss2 = cross_entropy_label_smooth(
        logits2, targets2, num_classes=num_classes2, epsilon=epsilon, tile_b=8
    )
    loss2 = jax.block_until_ready(loss2)
    ref2 = _reference(logits2, targets2, num_classes=num_classes2, epsilon=epsilon)
    assert jnp.allclose(loss2, ref2, atol=1e-5, rtol=1e-5), (loss2, ref2)

    # Case 3: bf16 logits + auto tile chooser (nb >= 2 split, f32 accumulation).
    num_classes3 = 256
    batch3 = 64
    k_logits3, k_targets3 = jax.random.split(key)
    logits3 = jax.random.normal(k_logits3, (batch3, num_classes3), dtype=jnp.bfloat16)
    targets3 = jax.random.randint(k_targets3, (batch3,), 0, num_classes3, dtype=jnp.int32)

    loss3 = cross_entropy_label_smooth(
        logits3, targets3, num_classes=num_classes3, epsilon=epsilon
    )
    loss3 = jax.block_until_ready(loss3)
    ref3 = _reference(logits3, targets3, num_classes=num_classes3, epsilon=epsilon)
    assert jnp.allclose(loss3, ref3, atol=1e-4, rtol=1e-4), (loss3, ref3)

    print("KERNEL_OK")
</pallas_src>

<mosaic_0001>
module attributes {stable_mosaic.version = 11 : i64} {
  func.func @_ce_label_smooth_kernel(%arg0: i32, %arg1: memref<8x1xi32, #tpu.memory_space<vmem>>, %arg2: memref<8x32xf32, #tpu.memory_space<vmem>>, %arg3: memref<8x128xf32, #tpu.memory_space<vmem>>) attributes {dimension_semantics = [#tpu.dimension_semantics<parallel>], iteration_bounds = array<i64: 1>, scalar_prefetch = 0 : i64, scratch_operands = 0 : i64, tpu.core_type = #tpu.core_type<tc>, window_params = [{pipeline_mode = #tpu.pipeline_mode<synchronous>, transform_indices = @transform_0, window_bounds = array<i64: 8, 1>}, {transform_indices = @transform_1, window_bounds = array<i64: 8, 32>}, {transform_indices = @transform_2, window_bounds = array<i64: 8, 128>}]} {
    %c0 = arith.constant 0 : index
    %c0_0 = arith.constant 0 : index
    %0 = vector.load %arg2[%c0, %c0_0] : memref<8x32xf32, #tpu.memory_space<vmem>>, vector<8x32xf32>
    %cst = arith.constant dense<0xFF800000> : vector<8xf32>
    %1 = vector.multi_reduction <maximumf>, %0, %cst [1] : vector<8x32xf32> to vector<8xf32>
    %2 = vector.shape_cast %1 : vector<8xf32> to vector<8x1xf32>
    %cst_1 = arith.constant dense<0.000000e+00> : vector<8xf32>
    %3 = vector.multi_reduction <add>, %0, %cst_1 [1] : vector<8x32xf32> to vector<8xf32>
    %4 = vector.shape_cast %3 : vector<8xf32> to vector<8x1xf32>
    %5 = tpu.iota {dimensions = array<i32: 1>} : vector<8x32xi32>
    %c8_i32 = arith.constant 8 : i32
    %6 = arith.muli %arg0, %c8_i32 : i32
    %7 = tpu.assume_multiple %6, 8 : i32
    %8 = arith.index_cast %7 : i32 to index
    %c0_2 = arith.constant 0 : index
    %9 = vector.load %arg1[%8, %c0_2] : memref<8x1xi32, #tpu.memory_space<vmem>>, vector<8x1xi32>
    %10 = vector.broadcast %9 : vector<8x1xi32> to vector<8x32xi32>
    %11 = arith.cmpi eq, %5, %10 : vector<8x32xi32>
    %c0_i32 = arith.constant 0 : i32
    %12 = arith.sitofp %c0_i32 : i32 to f32
    %13 = vector.broadcast %12 : f32 to vector<8x32xf32>
    %14 = arith.select %11, %0, %13 : vector<8x32xi1>, vector<8x32xf32>
    %cst_3 = arith.constant dense<0.000000e+00> : vector<8xf32>
    %15 = vector.multi_reduction <add>, %14, %cst_3 [1] : vector<8x32xf32> to vector<8xf32>
    %16 = vector.shape_cast %15 : vector<8xf32> to vector<8x1xf32>
    %17 = vector.broadcast %2 : vector<8x1xf32> to vector<8x32xf32>
    %18 = arith.subf %0, %17 : vector<8x32xf32>
    %19 = math.exp %18 : vector<8x32xf32>
    %cst_4 = arith.constant dense<0.000000e+00> : vector<8xf32>
    %20 = vector.multi_reduction <add>, %19, %cst_4 [1] : vector<8x32xf32> to vector<8xf32>
    %21 = vector.shape_cast %20 : vector<8xf32> to vector<8x1xf32>
    %22 = math.log %21 : vector<8x1xf32>
    %23 = arith.subf %16, %2 : vector<8x1xf32>
    %24 = arith.subf %23, %22 : vector<8x1xf32>
    %25 = arith.addf %2, %22 : vector<8x1xf32>
    %cst_5 = arith.constant 3.200000e+01 : f32
    %26 = vector.broadcast %cst_5 : f32 to vector<8x1xf32>
    %27 = arith.mulf %26, %25 : vector<8x1xf32>
    %28 = arith.subf %4, %27 : vector<8x1xf32>
    %cst_6 = arith.constant 0.899999976 : f32
    %29 = vector.broadcast %cst_6 : f32 to vector<8x1xf32>
    %30 = arith.mulf %29, %24 : vector<8x1xf32>
    %cst_7 = arith.constant 3.125000e-03 : f32
    %31 = vector.broadcast %cst_7 : f32 to vector<8x1xf32>
    %32 = arith.mulf %31, %28 : vector<8x1xf32>
    %33 = arith.addf %30, %32 : vector<8x1xf32>
    %cst_8 = arith.constant 0.000000e+00 : f32
    %34 = vector.broadcast %cst_8 : f32 to vector<8x1xf32>
    %35 = arith.subf %34, %33 : vector<8x1xf32>
    %c8_i32_9 = arith.constant 8 : i32
    %36 = arith.muli %arg0, %c8_i32_9 : i32
    %37 = tpu.iota {dimensions = array<i32: 0>} : vector<8x1xi32>
    %38 = vector.broadcast %36 : i32 to vector<8x1xi32>
    %39 = arith.addi %38, %37 : vector<8x1xi32>
    %c8_i32_10 = arith.constant 8 : i32
    %40 = vector.broadcast %c8_i32_10 : i32 to vector<8x1xi32>
    %41 = arith.cmpi slt, %39, %40 : vector<8x1xi32>
    %cst_11 = arith.constant 0.000000e+00 : f32
    %42 = vector.broadcast %cst_11 : f32 to vector<8x1xf32>
    %43 = arith.select %41, %35, %42 : vector<8x1xi1>, vector<8x1xf32>
    %44 = vector.shape_cast %43 : vector<8x1xf32> to vector<1x8x1xf32>
    %cst_12 = arith.constant dense<0.000000e+00> : vector<1xf32>
    %45 = vector.multi_reduction <add>, %44, %cst_12 [1, 2] : vector<1x8x1xf32> to vector<1xf32>
    %46 = vector.shape_cast %45 : vector<1xf32> to vector<1x1x1xf32>
    %47 = vector.extract %46[0, 0, 0] : f32 from vector<1x1x1xf32>
    %cst_13 = arith.constant 1.250000e-01 : f32
    %48 = arith.mulf %47, %cst_13 : f32
    %49 = vector.broadcast %48 : f32 to vector<8x128xf32>
    %c0_14 = arith.constant 0 : index
    %c0_15 = arith.constant 0 : index
    %50 = vector.load %arg3[%c0_14, %c0_15] : memref<8x128xf32, #tpu.memory_space<vmem>>, vector<8x128xf32>
    tpu.vector_store %arg3[%c0_14, %c0_15], %49 {strides = array<i32>} : memref<8x128xf32, #tpu.memory_space<vmem>>, vector<8x128xf32>,
    return
  }
  func.func @transform_0(%arg0: i32) -> (i32, i32) {
    %c0_i32 = arith.constant 0 : i32
    %c0_i32_0 = arith.constant 0 : i32
    %c0_i32_1 = arith.constant 0 : i32
    return %c0_i32, %c0_i32_0 : i32, i32
  }
  func.func @transform_1(%arg0: i32) -> (i32, i32) {
    %c0_i32 = arith.constant 0 : i32
    %c0_i32_0 = arith.constant 0 : i32
    return %arg0, %c0_i32 : i32, i32
  }
  func.func @transform_2(%arg0: i32) -> (i32, i32) {
    %c0_i32 = arith.constant 0 : i32
    %c0_i32_0 = arith.constant 0 : i32
    return %arg0, %c0_i32 : i32, i32
  }
}

</mosaic_0001>

<bundles_post_ra>
// kernel: tpu_custom_call.1
= control target key start
LH: loop header
LB: loop body
LE: loop exit
PB: predicated region body
PF: predicated region fallthrough
CT: control target
= control target key end

     0   :  { %vm13_vm0 = vcmask 261120   ;;  %s156_s0 = inlined_call_operand.vmem [shape: s32[8,1], index: 0, kind: input, shape index: {}]   ;;  %s157_s1 = inlined_call_operand.vmem [shape: f32[8,32], index: 1, kind: input, shape index: {}]   ;;  %s158_s2 = inlined_call_operand.hbm [shape: f32[8,128], index: 2, kind: output, shape index: {}]  }
   0x1   :  { %v12_v0 = vld [vmem:[%s157_s1] sm:$0xff] }
   0x2   :  { %7 = vsyncpa [#allocation3], 0  ;;  %v14_v1 = vsel %vm13_vm0, %v12_v0, -inf  ;;  %v117_v2 = vmov 0   ;;  %v24_v3 = vld [vmem:[%s156_s0] sm:$0xff]  ;;  %v20_v7 = vlaneseq  ;;  %v17_v14 = vsel %vm13_vm0, %v12_v0, 0.0 }
   0x3   :  { %88 = vset.pattern.permute.xlu0 %v117_v2  ;;  %vm56_vm2 = vcmask 7168   ;;  %s118_s0 = smov [#allocation2]  }
   0x4   :  { %15 = vmax.xlane.f32.xlu0 %v14_v1  ;;  %v21_v8 = vand.u32 127, %v20_v7  ;;  %s76_s1 = sshll.u32 %s118_s0, 4  ;;  %s77_s1 = int_to_ptr.vmem [resolvable:$true] %s76_s1 }
   0x5   :  { %s93_s15 = scalar_lea.vmem %s77_s1, 128  ;;  %p98_p1 = scmp.lt.s32.totalorder %s77_s1, %s77_s1 }
   0x6   :  { %p94_p0 = scmp.ne.s32.totalorder %s77_s1, %s93_s15  ;;  %p99_p2 = scmp.lt.s32.totalorder %s93_s15, %s93_s15 }
   0x8   :  { %p100_p3 = por %p99_p2, %p98_p1 }
   0xa   :  { %p101_p4 = pnand %p100_p3, %p94_p0 }
  0x1a   :  { %26 = vperm.xlu0 %88, %v24_v3  }
  0x91   :  { %v16_v4 = vpop.xlane.xlu0 %15 }
  0x92   :  { %v33_v5 = vsub.f32 %v12_v0, %v16_v4 }
  0x94   :  { %v34_v6 = vmul.f32 1.442695, %v33_v5 }
  0x96   :  { %89 = vpow2.f32 %v34_v6 }
  0x99   :  { %v27_v9 = vpop.permute.xlu0 %26 }
  0x9a   :  { %vm28_vm1 = vcmp.eq.s32.totalorder %v21_v8, %v27_v9 }
  0x9b   :  { %v29_v11 = vsel %vm28_vm1, %v12_v0, 0.0 }
  0x9c   :  { %v30_v13 = vsel %vm13_vm0, %v29_v11, 0.0 }
  0xa0   :  { %v90_v10 = vpop.eup %89 }
  0xa1   :  { %v36_v12 = vsel %vm13_vm0, %v90_v10, 0.0 }
  0xa2   :  { %37 = vadd.xlane.f32.xlu1 %v36_v12 }
  0xa6   :  { %31 = vadd.xlane.f32.xlu1 %v30_v13 }
  0xaa   :  { %18 = vadd.xlane.f32.xlu1 %v17_v14 }
 0x12f   :  { %v38_v15 = vpop.xlane.xlu1 %37 }
 0x130   :  { %91 = vlog2.f32 %v38_v15 }
 0x133   :  { %v32_v17 = vpop.xlane.xlu1 %31 }
 0x134   :  { %v41_v19 = vsub.f32 %v32_v17, %v16_v4 }
 0x137   :  { %v19_v21 = vpop.xlane.xlu1 %18 }
 0x13a   :  { %v92_v16 = vpop.eup %91 }
 0x13b   :  { %v40_v18 = vmul.f32 0.6931472, %v92_v16 }
 0x13d   :  { %v43_v20 = vadd.f32 %v40_v18, %v16_v4  ;;  %v42_v22 = vsub.f32 %v41_v19, %v40_v18 }
 0x13f   :  { %v44_v23 = vmul.f32 32.0, %v43_v20  ;;  %v46_v25 = vmul.f32 0.9, %v42_v22 }
 0x141   :  { %v45_v24 = vsub.f32 %v19_v21, %v44_v23 }
 0x143   :  { %v47_v26 = vmul.f32 0.003125, %v45_v24 }
 0x145   :  { %v48_v27 = vadd.f32 %v47_v26, %v46_v25 }
 0x147   :  { %v49_v28 = vsub.f32 0.0, %v48_v27 }
 0x149   :  { %v57_v29 = vsel %vm56_vm2, %v49_v28, 0.0 }
 0x14a   :  { %58 = vadd.xlane.f32.xlu1 %v57_v29 }
 0x1d7   :  { %v59_v30 = vpop.xlane.xlu1 %58 }
 0x1d8   :  { %v60_v31 = vrot.slane %v59_v30, 4 }
 0x1da   :  { %v61_v32 = vadd.f32 %v60_v31, %v59_v30 }
 0x1dc   :  { %v62_v33 = vrot.slane %v61_v32, 2 }
 0x1de   :  { %v63_v34 = vadd.f32 %v62_v33, %v61_v32 }
 0x1e0   :  { %v64_v35 = vrot.slane %v63_v34, 1 }
 0x1e2   :  { %v65_v36 = vadd.f32 %v64_v35, %v63_v34 }
 0x1e4   :  { %84 = vpush %v65_v36 }
 0x215   :  { %s85_s13 = spop %84 }
 0x216   :  { %s67_s14 = smul.f32 0.125, %s85_s13 }
 0x218   :  { %v68_v37 = vstv %s67_s14 }
 0x219   :  { %69 = vst [vmem:[#allocation2] sm:$0xff] %v68_v37 }
 0x21a   :  { %104 = shalt.err (!%p101_p4)
}
 0x21b   :  { %s105_s18 = scalar_lea.hbm %s158_s2, 128 }
 0x21c   :  { %p106_p5 = scmp.ne.s32.totalorder %s158_s2, %s105_s18  ;;  %p109_p6 = scmp.lt.u32.totalorder %s105_s18, %s158_s2 }
 0x21e   :  { %p111_p7 = pnand %p109_p6, %p106_p5 }
 0x220   :  { %114 = shalt.err (!%p111_p7)
}
 0x221   :  { %79 = dma.vmem_to_hbm [thread:$0]  %s77_s1, 128, %s158_s2, [#allocation3]  }
 0x222   :  { %115 = dma.done.wait [#allocation3], 128  }
 0x223   :  { %116 = vsyncadd [#allocation3], 4294967168 }
 0x224   :  { %83 = vsyncpa [#allocation3], 1 }

</bundles_post_ra>
